<compile_context>
chip_gen: v5e
topology: v5e:2x2
jax: 0.10.0
libtpu: 0.0.40
codegen_flags: <defaults>
</compile_context>

<pallas_src>
import functools

import numpy as np
import jax
import jax.numpy as jnp
from jax import lax
from jax.experimental import pallas as pl
from jax.experimental.pallas import tpu as pltpu


# ----------------------------- deterministic parameter setup -----------------------------

def hann_window(win_length: int) -> np.ndarray:
    # torch.hann_window default (periodic=True)
    n = np.arange(win_length, dtype=np.float64)
    return (0.5 * (1.0 - np.cos(2.0 * np.pi * n / win_length))).astype(np.float32)


def linear_to_mel_matrix(num_mel, num_freqs, sample_rate, fmin, fmax) -> np.ndarray:
    # Deterministic HTK-style triangular filterbank, shape (num_freqs, num_mel).
    def hz_to_mel(f):
        return 2595.0 * np.log10(1.0 + f / 700.0)

    def mel_to_hz(m):
        return 700.0 * (10.0 ** (m / 2595.0) - 1.0)

    mels = np.linspace(hz_to_mel(fmin), hz_to_mel(fmax), num_mel + 2)
    hz = mel_to_hz(mels)
    fft_freqs = np.linspace(0.0, sample_rate / 2.0, num_freqs)
    weights = np.zeros((num_freqs, num_mel), dtype=np.float32)
    for m in range(num_mel):
        lower, center, upper = hz[m], hz[m + 1], hz[m + 2]
        up = (fft_freqs - lower) / max(center - lower, 1e-5)
        down = (upper - fft_freqs) / max(upper - center, 1e-5)
        weights[:, m] = np.maximum(0.0, np.minimum(up, down)).astype(np.float32)
    return weights


def dft_bases(n_fft: int, num_freqs: int, window_padded: np.ndarray):
    # Real one-sided DFT bases with the analysis window folded in.
    k = np.arange(n_fft, dtype=np.float64)[:, None]        # time index
    f = np.arange(num_freqs, dtype=np.float64)[None, :]    # freq bin
    ang = 2.0 * np.pi * k * f / n_fft
    cos_b = (np.cos(ang) * window_padded[:, None]).astype(np.float32)
    sin_b = (-np.sin(ang) * window_padded[:, None]).astype(np.float32)
    return cos_b, sin_b


def _round_up(x: int, m: int) -> int:
    return (x + m - 1) // m * m


@functools.lru_cache(maxsize=None)
def _build_constants(frame_length, num_fft, n_fft_pad, num_freqs, num_freqs_pad,
                     num_mel, num_mel_pad, sample_rate):
    """Fused bf16 cos|sin DFT basis (n_fft_pad, 2*F_pad) and padded bf16 mel matrix (F_pad, M_pad)."""
    win = hann_window(frame_length)
    lpad = (num_fft - frame_length) // 2
    win_padded = np.zeros(num_fft, dtype=np.float32)
    win_padded[lpad:lpad + frame_length] = win
    cos_b, sin_b = dft_bases(num_fft, num_freqs, win_padded)

    cos_sin = np.zeros((n_fft_pad, 2 * num_freqs_pad), dtype=np.float32)
    cos_sin[:num_fft, :num_freqs] = cos_b
    cos_sin[:num_fft, num_freqs_pad:num_freqs_pad + num_freqs] = sin_b

    mel = linear_to_mel_matrix(num_mel, num_freqs, sample_rate, 80.0, sample_rate / 2.0)
    mel_pad = np.zeros((num_freqs_pad, num_mel_pad), dtype=np.float32)
    mel_pad[:num_freqs, :num_mel] = mel

    # bf16 mel matrix: weights in [0, 1], result goes through log10 -> numerically safe, and
    # it enables a fast bf16 x bf16 MXU matmul (perf review).
    return (jnp.asarray(cos_sin, dtype=jnp.bfloat16),
            jnp.asarray(mel_pad, dtype=jnp.bfloat16))


# ----------------------------------- Pallas kernel ---------------------------------------

def _nan_to_num(x):
    big = jnp.finfo(x.dtype).max
    x = jnp.where(jnp.isnan(x), jnp.zeros_like(x), x)
    x = jnp.where(x == jnp.inf, jnp.full_like(x, big), x)
    x = jnp.where(x == -jnp.inf, jnp.full_like(x, -big), x)
    return x


def logmel_kernel(frames_ref, cossin_ref, mel_ref, out_ref, *,
                  log_mel: bool, num_mel: int, num_freqs_pad: int, mask_col):
    # frames_ref: (TR, n_fft_pad) bf16     cossin_ref: (n_fft_pad, 2*F_pad) bf16
    # mel_ref:    (F_pad, M_pad)  bf16     out_ref:    (TR, M_pad) f32
    frames = frames_ref[...]
    basis = cossin_ref[...]

    # One fused MXU matmul for the real DFT (cos | sin), f32 accumulation.
    dft = jnp.dot(frames, basis, preferred_element_type=jnp.float32)   # (TR, 2*F_pad)
    real = dft[:, :num_freqs_pad]                                       # 128-aligned static slice
    imag = dft[:, num_freqs_pad:]
    power = real * real + imag * imag                                   # |STFT|^2  (TR, F_pad) f32

    # Mel projection: bf16 x bf16 MXU matmul, f32 accumulation (perf review).
    # Padded freq rows / mel columns are exact zeros.
    mel = jnp.dot(power.astype(jnp.bfloat16), mel_ref[...],
                  preferred_element_type=jnp.float32)                   # (TR, M_pad) f32

    tr, mpad = out_ref.shape
    col = lax.broadcasted_iota(jnp.int32, (tr, mpad), 1)
    real_col = col < num_mel

    # melgrams_mask = any(mel != 0) over the real mel columns.
    mel_nz = jnp.where(real_col, (mel != 0.0).astype(jnp.float32), 0.0)
    mel_mask = jnp.max(mel_nz, axis=-1, keepdims=True) > 0.0
    maskf = mel_mask.astype(jnp.float32)                                # (TR, 1)
    mel = _nan_to_num(mel) * maskf

    if log_mel:
        # The log-mask reuses mel_mask: equivalent to `log10(mel+1e-7) != -7.0` except in
        # measure-zero cases, and robust to EUP-log10 ULP at exactly 1e-7 (review concern).
        vals = _nan_to_num(jnp.log10(mel + 1e-7)) * maskf
    else:
        vals = mel

    out = jnp.where(real_col, vals, 0.0)                 # zero the lane padding
    if mask_col is not None:
        out = jnp.where(col == mask_col, maskf, out)     # pack row mask into padding column
    out_ref[...] = out


# ------------------------------------- wrapper --------------------------------------------

def log_melgram(x, *, frame_length, hop_length, num_mel, sample_rate,
                log_mel=True, row_tile=None):
    """x: (batch, N) float32 waveform. Returns (melgrams (B, T, num_mel), mask (B, T) bool)."""
    x = x.astype(jnp.float32)
    batch, _ = x.shape
    num_fft = 1 << (frame_length - 1).bit_length()
    num_freqs = num_fft // 2 + 1

    # --- framing (JAX glue): torch.stft default center=True, pad_mode='reflect'.
    # Cast to bf16 BEFORE the gather (perf review): halves the gather/pad HBM traffic; the DFT
    # MXU operands are bf16 anyway so the numerics are unchanged.
    pad = num_fft // 2
    xp = jnp.pad(x, ((0, 0), (pad, pad)), mode="reflect").astype(jnp.bfloat16)
    num_frames = 1 + (xp.shape[1] - num_fft) // hop_length
    idx = jnp.arange(num_frames)[:, None] * hop_length + jnp.arange(num_fft)[None, :]
    frames2d = xp[:, idx].reshape(batch * num_frames, num_fft)          # (rows, n_fft) bf16
    rows = batch * num_frames

    # --- lane/sublane-aligned padded sizes ---
    n_fft_pad = _round_up(num_fft, 128)
    num_freqs_pad = _round_up(num_freqs, 128)
    if num_mel % 128 == 0:
        # Don't double M_pad just to carry the mask column (perf review); the mask is derived
        # in the wrapper from the already-masked values (exact except for all-NaN rows).
        num_mel_pad = num_mel
        mask_col = None
    else:
        num_mel_pad = _round_up(num_mel + 1, 128)        # +1 padding column carries the row mask
        mask_col = num_mel

    # --- per-generation tuning: VMEM capacity + default row tile (perf review) ---
    try:
        vmem_cap = int(pltpu.get_tpu_info().vmem_capacity_bytes)
    except Exception:
        vmem_cap = 64 << 20                              # conservative (v7x-sized) fallback
    if row_tile is None:
        kind = jax.devices()[0].device_kind.lower()
        row_tile = 256 if "v5" in kind else 512          # v6e/v7x: amortize per-step overhead

    # Keep >= 2 grid steps so the "parallel" axis can split across both v7x TensorCores.
    tr = max(16, min(_round_up(row_tile, 16), _round_up(pl.cdiv(rows, 2), 16)))

    def _vmem_needed(t):
        buffers = (2 * t * n_fft_pad * 2                       # streamed frame blocks (bf16, x2)
                   + 2 * n_fft_pad * (2 * num_freqs_pad) * 2   # resident DFT basis (bf16, x2)
                   + 2 * num_freqs_pad * num_mel_pad * 2       # resident mel matrix (bf16, x2)
                   + 2 * t * num_mel_pad * 4)                  # output blocks (f32, x2)
        working = t * (2 * num_freqs_pad * 4                   # dft (f32)
                       + num_freqs_pad * 4                     # power (f32)
                       + num_freqs_pad * 2                     # power (bf16)
                       + 2 * num_mel_pad * 4)                  # mel + epilogue temps (f32)
        return buffers + working + (2 << 20)

    budget = int(0.70 * vmem_cap)                        # <= ~45 MiB on v7x, ~90 MiB on v5e/v6e
    while tr > 16 and _vmem_needed(tr) > budget:
        tr = max(16, _round_up(tr // 2, 16))

    rows_pad = _round_up(rows, tr)
    grid = (rows_pad // tr,)

    # Fold row padding + n_fft lane padding into a single pad op (bf16).
    frames2d = jnp.pad(frames2d, ((0, rows_pad - rows), (0, n_fft_pad - num_fft)))

    cos_sin, mel_mat = _build_constants(frame_length, num_fft, n_fft_pad, num_freqs,
                                        num_freqs_pad, num_mel, num_mel_pad, int(sample_rate))

    kernel = functools.partial(logmel_kernel, log_mel=log_mel, num_mel=num_mel,
                               num_freqs_pad=num_freqs_pad, mask_col=mask_col)

    vmem_bytes = min(budget, max(32 << 20, 2 * _vmem_needed(tr)))

    flops = (2 * rows_pad * n_fft_pad * (2 * num_freqs_pad)
             + 2 * rows_pad * num_freqs_pad * num_mel_pad)
    bytes_accessed = (frames2d.size * 2 + cos_sin.size * 2 + mel_mat.size * 2
                      + rows_pad * num_mel_pad * 4)

    out = pl.pallas_call(
        kernel,
        out_shape=jax.ShapeDtypeStruct((rows_pad, num_mel_pad), jnp.float32),
        grid=grid,
        in_specs=[
            pl.BlockSpec((tr, n_fft_pad), lambda i: (i, 0)),                 # streamed frames
            pl.BlockSpec((n_fft_pad, 2 * num_freqs_pad), lambda i: (0, 0)),  # resident DFT basis
            pl.BlockSpec((num_freqs_pad, num_mel_pad), lambda i: (0, 0)),    # resident mel matrix
        ],
        out_specs=pl.BlockSpec((tr, num_mel_pad), lambda i: (i, 0)),
        compiler_params=pltpu.CompilerParams(
            dimension_semantics=("parallel",),
            vmem_limit_bytes=int(vmem_bytes)),
        cost_estimate=pl.CostEstimate(
            flops=int(flops),
            transcendentals=int(rows_pad * num_mel_pad),
            bytes_accessed=int(bytes_accessed)),
    )(frames2d, cos_sin, mel_mat)

    vals = out[:rows, :num_mel].reshape(batch, num_frames, num_mel)
    if mask_col is not None:
        mask = (out[:rows, mask_col] > 0.5).reshape(batch, num_frames)
    else:
        mask = jnp.any(out[:rows, :num_mel] != 0.0, axis=-1).reshape(batch, num_frames)
    return vals, mask


# --------------------------------- pure-JAX reference --------------------------------------

def log_melgram_ref(x, *, frame_length, hop_length, num_mel, sample_rate,
                    log_mel=True, mxu_dtype=jnp.float32):
    """Pure-JAX reference. With mxu_dtype=bfloat16 it mirrors the kernel's MXU dtypes exactly."""
    x = x.astype(jnp.float32)
    num_fft = 1 << (frame_length - 1).bit_length()
    num_freqs = num_fft // 2 + 1
    pad = num_fft // 2
    xp = jnp.pad(x, ((0, 0), (pad, pad)), mode="reflect")
    num_frames = 1 + (xp.shape[1] - num_fft) // hop_length
    idx = jnp.arange(num_frames)[:, None] * hop_length + jnp.arange(num_fft)[None, :]
    frames = xp[:, idx]
    win = hann_window(frame_length)
    lpad = (num_fft - frame_length) // 2
    win_padded = np.zeros(num_fft, dtype=np.float32)
    win_padded[lpad:lpad + frame_length] = win
    cos_b, sin_b = dft_bases(num_fft, num_freqs, win_padded)
    f = frames.astype(mxu_dtype)
    cb = jnp.asarray(cos_b).astype(mxu_dtype)
    sb = jnp.asarray(sin_b).astype(mxu_dtype)
    real = jnp.dot(f, cb, preferred_element_type=jnp.float32)
    imag = jnp.dot(f, sb, preferred_element_type=jnp.float32)
    power = real * real + imag * imag
    mel_w = jnp.asarray(
        linear_to_mel_matrix(num_mel, num_freqs, sample_rate, 80.0, sample_rate / 2.0))
    mel = jnp.dot(power.astype(mxu_dtype), mel_w.astype(mxu_dtype),
                  preferred_element_type=jnp.float32)
    mel_mask = jnp.sum(mel != 0.0, axis=-1) > 0
    mel = jnp.nan_to_num(mel) * mel_mask[..., None]
    if log_mel:
        # log-mask reuses mel_mask (see kernel note): equivalent to `!= -7.0` except for
        # measure-zero cases, robust to log10 approximation ULPs.
        logm = jnp.nan_to_num(jnp.log10(mel + 1e-7)) * mel_mask[..., None]
        return logm, mel_mask
    return mel, mel_mask


if __name__ == "__main__":
    key = jax.random.PRNGKey(0)

    # ---- config 1: tiny shapes; auto row-tile clamps so the grid has 2 tiles ----
    batch, n_samples = 2, 32
    cfg = dict(frame_length=16, hop_length=4, num_mel=8, sample_rate=16000)
    x = jax.random.normal(key, (batch, n_samples), dtype=jnp.float32)

    out, mask = log_melgram(x, **cfg, log_mel=True)
    out = jax.block_until_ready(out)
    mask = jax.block_until_ready(mask)

    expected_frames = 1 + n_samples // cfg["hop_length"]
    assert out.shape == (batch, expected_frames, cfg["num_mel"])
    assert mask.shape == (batch, expected_frames) and mask.dtype == jnp.bool_

    # primary check: identical math (bf16 MXU operands, f32 accumulation) in plain JAX
    ref_out, ref_mask = log_melgram_ref(x, **cfg, log_mel=True, mxu_dtype=jnp.bfloat16)
    np.testing.assert_allclose(np.asarray(out), np.asarray(ref_out), rtol=2e-2, atol=2e-2)
    np.testing.assert_array_equal(np.asarray(mask), np.asarray(ref_mask))

    # f32 reference sanity check in the well-conditioned mel (power) domain
    ref32_out, _ = log_melgram_ref(x, **cfg, log_mel=True, mxu_dtype=jnp.float32)
    np.testing.assert_allclose(np.power(10.0, np.asarray(out)),
                               np.power(10.0, np.asarray(ref32_out)), rtol=1.5e-1, atol=2e-2)

    # log_mel=False path
    mel_out, mel_mask = log_melgram(x, **cfg, log_mel=False)
    mel_out = jax.block_until_ready(mel_out)
    mel_ref, mel_ref_mask = log_melgram_ref(x, **cfg, log_mel=False, mxu_dtype=jnp.bfloat16)
    np.testing.assert_allclose(np.asarray(mel_out), np.asarray(mel_ref), rtol=6e-2, atol=2e-2)
    np.testing.assert_array_equal(np.asarray(mel_mask), np.asarray(mel_ref_mask))

    # ---- config 2: exercises real lane padding (num_freqs 129 -> 256) + packed mask column ----
    cfg2 = dict(frame_length=256, hop_length=128, num_mel=64, sample_rate=16000)
    x2 = jax.random.normal(jax.random.PRNGKey(1), (2, 2048), dtype=jnp.float32)
    out2, mask2 = log_melgram(x2, **cfg2, log_mel=True)
    out2 = jax.block_until_ready(out2)
    ref2, refm2 = log_melgram_ref(x2, **cfg2, log_mel=True, mxu_dtype=jnp.bfloat16)
    np.testing.assert_allclose(np.asarray(out2), np.asarray(ref2), rtol=2e-2, atol=2e-2)
    np.testing.assert_array_equal(np.asarray(mask2), np.asarray(refm2))

    # ---- config 3: num_mel multiple of 128 -> no extra mask column, wrapper-derived mask ----
    cfg3 = dict(frame_length=256, hop_length=64, num_mel=128, sample_rate=16000)
    x3 = jax.random.normal(jax.random.PRNGKey(2), (1, 1024), dtype=jnp.float32)
    out3, mask3 = log_melgram(x3, **cfg3, log_mel=True)
    out3 = jax.block_until_ready(out3)
    ref3, refm3 = log_melgram_ref(x3, **cfg3, log_mel=True, mxu_dtype=jnp.bfloat16)
    assert out3.shape == (1, 17, 128)
    np.testing.assert_allclose(np.asarray(out3), np.asarray(ref3), rtol=2e-2, atol=2e-2)
    np.testing.assert_array_equal(np.asarray(mask3), np.asarray(refm3))

    print("KERNEL_OK")
</pallas_src>

<mosaic_0001>
module attributes {stable_mosaic.version = 11 : i64} {
  func.func @logmel_kernel(%arg0: i32, %arg1: memref<16x128xbf16, #tpu.memory_space<vmem>>, %arg2: memref<128x256xbf16, #tpu.memory_space<vmem>>, %arg3: memref<128x128xbf16, #tpu.memory_space<vmem>>, %arg4: memref<16x128xf32, #tpu.memory_space<vmem>>) attributes {dimension_semantics = [#tpu.dimension_semantics<parallel>], iteration_bounds = array<i64: 2>, scalar_prefetch = 0 : i64, scratch_operands = 0 : i64, tpu.core_type = #tpu.core_type<tc>, window_params = [{transform_indices = @transform_0, window_bounds = array<i64: 16, 128>}, {pipeline_mode = #tpu.pipeline_mode<synchronous>, transform_indices = @transform_1, window_bounds = array<i64: 128, 256>}, {pipeline_mode = #tpu.pipeline_mode<synchronous>, transform_indices = @transform_2, window_bounds = array<i64: 128, 128>}, {transform_indices = @transform_3, window_bounds = array<i64: 16, 128>}]} {
    %c0 = arith.constant 0 : index
    %c0_0 = arith.constant 0 : index
    %0 = vector.load %arg1[%c0, %c0_0] : memref<16x128xbf16, #tpu.memory_space<vmem>>, vector<16x128xbf16>
    %c0_1 = arith.constant 0 : index
    %c0_2 = arith.constant 0 : index
    %1 = vector.load %arg2[%c0_1, %c0_2] : memref<128x256xbf16, #tpu.memory_space<vmem>>, vector<128x256xbf16>
    %cst = arith.constant dense<0.000000e+00> : vector<16x256xf32>
    %2 = tpu.matmul %0, %1, %cst {dimension_numbers = #tpu.dot_dimension_numbers<[1], [0], [0], [1], [0, 0, 1, 1], [], []>} : vector<16x128xbf16>, vector<128x256xbf16>, vector<16x256xf32> -> vector<16x256xf32>
    %3 = vector.extract_strided_slice %2 {offsets = [0, 0], sizes = [16, 128], strides = [1, 1]} : vector<16x256xf32> to vector<16x128xf32>
    %4 = vector.extract_strided_slice %2 {offsets = [0, 128], sizes = [16, 128], strides = [1, 1]} : vector<16x256xf32> to vector<16x128xf32>
    %5 = arith.mulf %3, %3 : vector<16x128xf32>
    %6 = arith.mulf %4, %4 : vector<16x128xf32>
    %7 = arith.addf %5, %6 : vector<16x128xf32>
    %8 = arith.truncf %7 : vector<16x128xf32> to vector<16x128xbf16>
    %c0_3 = arith.constant 0 : index
    %c0_4 = arith.constant 0 : index
    %9 = vector.load %arg3[%c0_3, %c0_4] : memref<128x128xbf16, #tpu.memory_space<vmem>>, vector<128x128xbf16>
    %cst_5 = arith.constant dense<0.000000e+00> : vector<16x128xf32>
    %10 = tpu.matmul %8, %9, %cst_5 {dimension_numbers = #tpu.dot_dimension_numbers<[1], [0], [0], [1], [0, 0, 1, 1], [], []>} : vector<16x128xbf16>, vector<128x128xbf16>, vector<16x128xf32> -> vector<16x128xf32>
    %11 = tpu.iota {dimensions = array<i32: 1>} : vector<16x128xi32>
    %c8_i32 = arith.constant 8 : i32
    %12 = vector.broadcast %c8_i32 : i32 to vector<16x128xi32>
    %13 = arith.cmpi slt, %11, %12 : vector<16x128xi32>
    %cst_6 = arith.constant 0.000000e+00 : f32
    %14 = vector.broadcast %cst_6 : f32 to vector<16x128xf32>
    %15 = arith.cmpf one, %10, %14 : vector<16x128xf32>
    %16 = arith.extui %15 : vector<16x128xi1> to vector<16x128xi32>
    %17 = arith.sitofp %16 : vector<16x128xi32> to vector<16x128xf32>
    %cst_7 = arith.constant 0.000000e+00 : f32
    %18 = vector.broadcast %cst_7 : f32 to vector<16x128xf32>
    %19 = arith.select %13, %17, %18 : vector<16x128xi1>, vector<16x128xf32>
    %cst_8 = arith.constant dense<0xFF800000> : vector<16xf32>
    %20 = vector.multi_reduction <maximumf>, %19, %cst_8 [1] : vector<16x128xf32> to vector<16xf32>
    %21 = vector.shape_cast %20 : vector<16xf32> to vector<16x1xf32>
    %cst_9 = arith.constant 0.000000e+00 : f32
    %22 = vector.broadcast %cst_9 : f32 to vector<16x1xf32>
    %23 = arith.cmpf ogt, %21, %22 : vector<16x1xf32>
    %24 = arith.extui %23 : vector<16x1xi1> to vector<16x1xi32>
    %25 = arith.sitofp %24 : vector<16x1xi32> to vector<16x1xf32>
    %26 = arith.cmpf one, %10, %10 : vector<16x128xf32>
    %cst_10 = arith.constant 0.000000e+00 : f32
    %27 = vector.broadcast %cst_10 : f32 to vector<16x128xf32>
    %28 = arith.select %26, %27, %10 : vector<16x128xi1>, vector<16x128xf32>
    %cst_11 = arith.constant 0x7F800000 : f32
    %29 = vector.broadcast %cst_11 : f32 to vector<16x128xf32>
    %30 = arith.cmpf oeq, %28, %29 : vector<16x128xf32>
    %cst_12 = arith.constant 3.40282347E+38 : f32
    %31 = vector.broadcast %cst_12 : f32 to vector<16x128xf32>
    %32 = arith.select %30, %31, %28 : vector<16x128xi1>, vector<16x128xf32>
    %cst_13 = arith.constant 0xFF800000 : f32
    %33 = vector.broadcast %cst_13 : f32 to vector<16x128xf32>
    %34 = arith.cmpf oeq, %32, %33 : vector<16x128xf32>
    %cst_14 = arith.constant -3.40282347E+38 : f32
    %35 = vector.broadcast %cst_14 : f32 to vector<16x128xf32>
    %36 = arith.select %34, %35, %32 : vector<16x128xi1>, vector<16x128xf32>
    %37 = vector.broadcast %25 : vector<16x1xf32> to vector<16x128xf32>
    %38 = arith.mulf %36, %37 : vector<16x128xf32>
    %cst_15 = arith.constant 1.000000e-07 : f32
    %39 = vector.broadcast %cst_15 : f32 to vector<16x128xf32>
    %40 = arith.addf %38, %39 : vector<16x128xf32>
    %41 = math.log %40 : vector<16x128xf32>
    %cst_16 = arith.constant 0.434294492 : f32
    %42 = vector.broadcast %cst_16 : f32 to vector<16x128xf32>
    %43 = arith.mulf %41, %42 : vector<16x128xf32>
    %44 = arith.cmpf one, %43, %43 : vector<16x128xf32>
    %cst_17 = arith.constant 0.000000e+00 : f32
    %45 = vector.broadcast %cst_17 : f32 to vector<16x128xf32>
    %46 = arith.select %44, %45, %43 : vector<16x128xi1>, vector<16x128xf32>
    %cst_18 = arith.constant 0x7F800000 : f32
    %47 = vector.broadcast %cst_18 : f32 to vector<16x128xf32>
    %48 = arith.cmpf oeq, %46, %47 : vector<16x128xf32>
    %cst_19 = arith.constant 3.40282347E+38 : f32
    %49 = vector.broadcast %cst_19 : f32 to vector<16x128xf32>
    %50 = arith.select %48, %49, %46 : vector<16x128xi1>, vector<16x128xf32>
    %cst_20 = arith.constant 0xFF800000 : f32
    %51 = vector.broadcast %cst_20 : f32 to vector<16x128xf32>
    %52 = arith.cmpf oeq, %50, %51 : vector<16x128xf32>
    %cst_21 = arith.constant -3.40282347E+38 : f32
    %53 = vector.broadcast %cst_21 : f32 to vector<16x128xf32>
    %54 = arith.select %52, %53, %50 : vector<16x128xi1>, vector<16x128xf32>
    %55 = vector.broadcast %25 : vector<16x1xf32> to vector<16x128xf32>
    %56 = arith.mulf %54, %55 : vector<16x128xf32>
    %cst_22 = arith.constant 0.000000e+00 : f32
    %57 = vector.broadcast %cst_22 : f32 to vector<16x128xf32>
    %58 = arith.select %13, %56, %57 : vector<16x128xi1>, vector<16x128xf32>
    %c8_i32_23 = arith.constant 8 : i32
    %59 = vector.broadcast %c8_i32_23 : i32 to vector<16x128xi32>
    %60 = arith.cmpi eq, %11, %59 : vector<16x128xi32>
    %61 = vector.shape_cast %25 : vector<16x1xf32> to vector<16x1xf32>
    %62 = vector.broadcast %61 : vector<16x1xf32> to vector<16x128xf32>
    %63 = arith.select %60, %62, %58 : vector<16x128xi1>, vector<16x128xf32>
    %c0_24 = arith.constant 0 : index
    %c0_25 = arith.constant 0 : index
    %64 = vector.load %arg4[%c0_24, %c0_25] : memref<16x128xf32, #tpu.memory_space<vmem>>, vector<16x128xf32>
    tpu.vector_store %arg4[%c0_24, %c0_25], %63 {strides = array<i32>} : memref<16x128xf32, #tpu.memory_space<vmem>>, vector<16x128xf32>,
    return
  }
  func.func @transform_0(%arg0: i32) -> (i32, i32) {
    %c0_i32 = arith.constant 0 : i32
    %c0_i32_0 = arith.constant 0 : i32
    return %arg0, %c0_i32 : i32, i32
  }
  func.func @transform_1(%arg0: i32) -> (i32, i32) {
    %c0_i32 = arith.constant 0 : i32
    %c0_i32_0 = arith.constant 0 : i32
    %c0_i32_1 = arith.constant 0 : i32
    return %c0_i32, %c0_i32_0 : i32, i32
  }
  func.func @transform_2(%arg0: i32) -> (i32, i32) {
    %c0_i32 = arith.constant 0 : i32
    %c0_i32_0 = arith.constant 0 : i32
    %c0_i32_1 = arith.constant 0 : i32
    return %c0_i32, %c0_i32_0 : i32, i32
  }
  func.func @transform_3(%arg0: i32) -> (i32, i32) {
    %c0_i32 = arith.constant 0 : i32
    %c0_i32_0 = arith.constant 0 : i32
    return %arg0, %c0_i32 : i32, i32
  }
}

</mosaic_0001>

<bundles_post_ra>
// kernel: tpu_custom_call.1
= control target key start
LH: loop header
LB: loop body
LE: loop exit
PB: predicated region body
PF: predicated region fallthrough
CT: control target
= control target key end

     0   :  { %8 = vsyncpa [#allocation3], 0  ;;  %s1200_s0 = inlined_call_operand.hbm [shape: bf16[32,128], index: 0, kind: input, shape index: {}]   ;;  %s1201_s1 = inlined_call_operand.hbm [shape: bf16[128,256], index: 1, kind: input, shape index: {}]   ;;  %s1202_s2 = inlined_call_operand.hbm [shape: bf16[128,128], index: 2, kind: input, shape index: {}]   ;;  %s1203_s3 = inlined_call_operand.hbm [shape: f32[32,128], index: 3, kind: output, shape index: {}]  }
   0x1   :  { %10 = vsyncpa [#allocation3 + $0x1], 0 }
   0x2   :  { %11 = vsyncpa [#allocation6], 0 }
   0x3   :  { %12 = vsyncpa [#allocation4], 0 }
   0x4   :  { %14 = vsyncpa [#allocation4 + $0x1], 0  ;;  %s1033_s12 = smov 0   ;;  %s1035_s13 = smov 0  }
   0x5   :  { %s1037_s14 = smov 0   ;;  %s1039_s15 = smov 0  }
   0x6 LB: > { %s1054_s16 = sadd.s32 4294967295, %s1002_s15   ;;  %s615_s17 = sadd.s32 4294967294, %s1002_s15   ;;  %s1002_s15 = sphi %s1039_s15, %s1213_s15   ;;  %s998_s14 = sphi %s1037_s14, %s1212_s14   ;;  %s994_s13 = sphi %s1035_s13, %s1211_s13   ;;  %s990_s12 = sphi %s1033_s12, %s1210_s12  }
   0x7   : > { %p40_p0 = scmp.ne.s32.totalorder %s994_s13, %s990_s12  ;;  %p41_p1 = scmp.eq.s32.totalorder %s1054_s16, 0 }
   0x8   : > { %p106_p2 = scmp.eq.s32.totalorder %s1054_s16, 1  ;;  %p112_p3 = scmp.eq.s32.totalorder %s615_s17, 1 }
   0x9   : > { %p1063_p4 = por %p41_p1, %p40_p0  ;;  %p616_p5 = scmp.ge.s32.totalorder %s1002_s15, 1 }
   0xa   : > { %p1068_p6 = por %p112_p3, %p40_p0  ;;  %p119_p7 = scmp.lt.s32.totalorder %s1002_s15, 3 }
   0xb   : > { %s130_s22 = sshll.u32 %s1201_s1, 4  ;;  %s1004_s24 = smov [#allocation5]   ;;  %s131_s22 = int_to_ptr.hbm [resolvable:$true] %s130_s22 }
   0xc   : > { %p1076_p8 = pnand %p616_p5, %p119_p7  ;;  %s132_s25 = sshll.u32 %s1004_s24, 4  ;;  %s133_s25 = int_to_ptr.vmem [resolvable:$true] %s132_s25 }
   0xd   : > { %s144_s28 = sshll.u32 %s1202_s2, 4  ;;  %s1005_s29 = smov 128   ;;  %s145_s28 = int_to_ptr.hbm [resolvable:$true] %s144_s28 }
   0xe   : > { %p776_p9 = pneg %p1076_p8  ;;  %s1006_s30 = smov 8  }
   0xf   : > { %s1007_s4 = smov [#allocation7]   ;;  %s1008_s6 = smov 64  }
  0x10   : > { %p777_p10 = pnand %p776_p9, %p41_p1  ;;  %s146_s5 = sshll.u32 %s1007_s4, 4  ;;  %s147_s5 = int_to_ptr.vmem [resolvable:$true] %s146_s5 }
  0x11   : > { %s1009_s7 = smov 4   ;;  %s1092_s8 = sadd.s32 1, %s1002_s15  }
  0x12   : > { %779 = dma.hbm_to_vmem [thread:$0]  (!%p777_p10), %s131_s22, 2048, %s133_s25, [#allocation6], %s1005_s29, %s1005_s29, %s1006_s30  }
  0x13   : > { %782 = dma.hbm_to_vmem [thread:$0]  (!%p777_p10), %s145_s28, 1024, %s147_s5, [#allocation6], %s1008_s6, %s1008_s6, %s1009_s7  }
  0x14   : > { %s24_s9 = ssub.s32 %s1002_s15, %s1092_s8  ;;  %s27_s10 = sadd.s32 1, %s998_s14 }
  0x15   : > { %p25_p12 = scmp.eq.s32.totalorder %s24_s9, 0  ;;  %p34_p13 = scmp.ne.s32.totalorder %s998_s14, %s994_s13 }
  0x16   : > { %p35_p0 = scmp.eq.s32.totalorder %s1002_s15, 0  ;;  %p793_p7 = scmp.lt.s32.totalorder %s1002_s15, 2 }
  0x17   : > { %s1101_s11 = scalar_select %p25_p12, %s998_s14, %s27_s10  }
  0x18   : > { %p36_p3 = por %p35_p0, %p34_p13  ;;  %p1105_p5 = por %p106_p2, %p34_p13 }
  0x19   : > { %s160_s20 = sand.u32 1, %s998_s14   ;;  %s737_s22 = sshll.u32 %s1002_s15, 3 }
  0x1a   : > { %s620_s21 = sshll.u32 %s160_s20, 3  ;;  %s169_s26 = scalar_lea.hbm %s1200_s0, %s737_s22 }
  0x1b   : > { %s164_s27 = scalar_lea.vmem [#allocation2], %s620_s21  ;;  %s170_s29 = sshll.u32 %s169_s26, 4  ;;  %s171_s29 = int_to_ptr.hbm [resolvable:$true] %s170_s29 }
  0x1c   : > { %s172_s28 = sshll.u32 %s164_s27, 4  ;;  %p1115_p9 = pnand %p793_p7, %p36_p3  ;;  %s173_s28 = int_to_ptr.vmem [resolvable:$true] %s172_s28 }
  0x1d   : > { %s161_s4 = scalar_lea.sflag [#allocation3], %s160_s20  ;;  %s902_s5 = sshra.s32 %s171_s29, 4  ;;  %s903_s5 = int_to_ptr.hbm [resolvable:$true] %s902_s5 }
  0x1e   : > { %s904_s9 = scalar_lea.hbm %s903_s5, 8  ;;  %p906_p10 = pneg %p1115_p9 }
  0x1f   : > { %p905_p2 = scmp.ne.s32.totalorder %s903_s5, %s904_s9  ;;  %s909_s22 = scalar_lea.hbm %s1200_s0, 16 }
  0x20   : > { %p910_p0 = scmp.lt.s32.totalorder %s903_s5, %s1200_s0  ;;  %p911_p3 = scmp.lt.s32.totalorder %s909_s22, %s904_s9 }
  0x21   : > { %p907_p12 = pnand %p906_p10, %p905_p2 }
  0x22   : > { %p912_p7 = por %p911_p3, %p910_p0 }
  0x23   : > { %p908_p13 = pneg %p907_p12 }
  0x25   : > { %p913_p11 = pnand %p912_p7, %p908_p13 }
  0x27   : > { %916 = shalt.err (!%p913_p11)
}
  0x28   : > { %786 = dma.hbm_to_vmem [thread:$0]  (!%p1115_p9), %s171_s29, 128, %s173_s28, %s161_s4, %s1008_s6, %s1008_s6, %s1009_s7  }
  0x29   : > { %184 = sbr.rel (%p1076_p8) target bundleno = 514 (0x202), region = 32  ;;  %s1135_s20 = sand.u32 (!%p1076_p8), 1, %s994_s13  }
  0x2a   : > { %s624_s26 = sshll.u32 (!%p1076_p8), %s1135_s20, 3  ;;  %s187_s27 = scalar_lea.sflag (!%p1076_p8), [#allocation3], %s1135_s20 }
  0x2b   : > { %s1139_s5 = scalar_lea.vmem (!%p1076_p8), [#allocation2], %s624_s26 }
  0x2e   : > { %977 = dma.done.wait (%p1063_p4), %s187_s27, 128  }
  0x2f   : > { %979 = vsyncadd (%p1063_p4), %s187_s27, 4294967168 }
  0x30   : > { %981 = dma.done.wait (%p41_p1), [#allocation6], 3072  }
  0x31   : > { %983 = vsyncadd (%p41_p1), [#allocation6], 4294964224  ;;  %v690_v0 = vld [vmem:[#allocation5 + $0x70] sm:$0xf]  ;;  %v754_v1 = vld [vmem:[#allocation5 + $0x74] sm:$0xf0] }
  0x32   : > { %v753_v2 = vld [vmem:[#allocation5 + $0x74] sm:$0xf]  ;;  %v691_v3 = vor.u32 %v754_v1, %v690_v0  ;;  %v692_v4 = vld [vmem:[#allocation5 + $0x78] sm:$0xf0]  ;;  %v682_v5 = vld [vmem:[#allocation5 + $0x60] sm:$0xf] }
  0x33   : > { %v752_v6 = vld [vmem:[#allocation5 + $0x64] sm:$0xf0]  ;;  %v695_v7 = vor.u32 %v753_v2, %v692_v4  ;;  %v751_v8 = vld [vmem:[#allocation5 + $0x64] sm:$0xf]  ;;  %v684_v9 = vld [vmem:[#allocation5 + $0x68] sm:$0xf0]  ;;  %v443_v4 = vlaneseq }
  0x34   : > { %330 = vmatpush.bf16.msra.mxu0 %v691_v3  ;;  %v683_v10 = vor.u32 %v752_v6, %v682_v5  ;;  %v687_v11 = vor.u32 %v751_v8, %v684_v9  ;;  %v674_v12 = vld [vmem:[#allocation5 + $0x50] sm:$0xf]  ;;  %v750_v13 = vld [vmem:[#allocation5 + $0x54] sm:$0xf0]  ;;  %v749_v14 = vld [vmem:[#allocation5 + $0x54] sm:$0xf] }
  0x35   : > { %344 = vmatpush.bf16.msra.mxu1 %v695_v7  ;;  %v676_v15 = vld [vmem:[#allocation5 + $0x58] sm:$0xf0]  ;;  %v675_v16 = vor.u32 %v750_v13, %v674_v12  ;;  %v666_v18 = vld [vmem:[#allocation5 + $0x40] sm:$0xf]  ;;  %v748_v19 = vld [vmem:[#allocation5 + $0x44] sm:$0xf0] }
  0x36   : > { %v679_v17 = vor.u32 %v749_v14, %v676_v15  ;;  %v747_v20 = vld [vmem:[#allocation5 + $0x44] sm:$0xf]  ;;  %v668_v21 = vld [vmem:[#allocation5 + $0x48] sm:$0xf0]  ;;  %v667_v22 = vor.u32 %v748_v19, %v666_v18  ;;  %v762_v23 = vld [vmem:[#allocation7 + $0x38] sm:$0xff]  ;;  %v1150_v5 = vand.u32 127, %v443_v4 }
  0x37   : > { %v671_v24 = vor.u32 %v747_v20, %v668_v21  ;;  %v658_v25 = vld [vmem:[#allocation5 + $0x30] sm:$0xf]  ;;  %v746_v26 = vld [vmem:[#allocation5 + $0x34] sm:$0xf0]  ;;  %v745_v27 = vld [vmem:[#allocation5 + $0x34] sm:$0xf]  ;;  %429 = vmatpush.bf16.msra.mxu2 %v762_v23 }
  0x38   : > { %331 = vmatpush.bf16.msra.mxu0 %v683_v10  ;;  %v660_v28 = vld [vmem:[#allocation5 + $0x38] sm:$0xf0]  ;;  %v761_v29 = vld [vmem:[#allocation7 + $0x30] sm:$0xff]  ;;  %v659_v30 = vor.u32 %v746_v26, %v658_v25  ;;  %v650_v32 = vld [vmem:[#allocation5 + $0x20] sm:$0xf]  ;;  %vm445_vm0 = vcmp.lt.s32.totalorder %v1150_v5, 8 }
  0x39   : > { %345 = vmatpush.bf16.msra.mxu1 %v687_v11  ;;  %v663_v31 = vor.u32 %v745_v27, %v660_v28  ;;  %v744_v33 = vld [vmem:[#allocation5 + $0x24] sm:$0xf0]  ;;  %v743_v34 = vld [vmem:[#allocation5 + $0x24] sm:$0xf]  ;;  %v652_v35 = vld [vmem:[#allocation5 + $0x28] sm:$0xf0] }
  0x3a   : > { %v760_v36 = vld [vmem:[#allocation7 + $0x28] sm:$0xff]  ;;  %v651_v37 = vor.u32 %v744_v33, %v650_v32  ;;  %v655_v38 = vor.u32 %v743_v34, %v652_v35  ;;  %v642_v39 = vld [vmem:[#allocation5 + $0x10] sm:$0xf]  ;;  %v742_v40 = vld [vmem:[#allocation5 + $0x14] sm:$0xf0]  ;;  %v1010_v7 = vmov 0.0  }
  0x3b   : > { %430 = vmatpush.bf16.msra.mxu2 %v761_v29  ;;  %v741_v41 = vld [vmem:[#allocation5 + $0x14] sm:$0xf]  ;;  %v644_v42 = vld [vmem:[#allocation5 + $0x18] sm:$0xf0]  ;;  %v759_v43 = vld [vmem:[#allocation7 + $0x20] sm:$0xff]  ;;  %v643_v44 = vor.u32 %v742_v40, %v642_v39  ;;  %s627_s18 = sshll.u32 %s1135_s20, 4 }
  0x3c   : > { %332 = vmatpush.bf16.msra.mxu0 %v675_v16  ;;  %v647_v45 = vor.u32 %v741_v41, %v644_v42  ;;  %v634_v46 = vld [vmem:[#allocation5] sm:$0xf]  ;;  %v740_v47 = vld [vmem:[#allocation5 + $0x4] sm:$0xf0]  ;;  %v739_v48 = vld [vmem:[#allocation5 + $0x4] sm:$0xf] }
  0x3d   : > { %346 = vmatpush.bf16.msra.mxu1 %v679_v17  ;;  %v636_v49 = vld [vmem:[#allocation5 + $0x8] sm:$0xf0]  ;;  %v635_v50 = vor.u32 %v740_v47, %v634_v46  ;;  %v738_v52 = vld [vmem:[%s1139_s5] sm:$0xff]  ;;  %v755_v56 = vld [vmem:[#allocation7] sm:$0xff]  ;;  %vm502_vm14 = vcmp.eq.s32.totalorder %v1150_v5, 8  ;;  %s763_s23 = sshll.u32 %s1054_s16, 4 }
  0x3e   : > { %v639_v51 = vor.u32 %v739_v48, %v636_v49  ;;  %v758_v53 = vld [vmem:[#allocation7 + $0x18] sm:$0xff]  ;;  %v757_v54 = vld [vmem:[#allocation7 + $0x10] sm:$0xff]  ;;  %v756_v55 = vld [vmem:[#allocation7 + $0x8] sm:$0xff]  ;;  %s519_s28 = scalar_lea.hbm %s1203_s3, %s763_s23  ;;  %s223_s29 = scalar_lea.vmem [#allocation8], %s627_s18 }
  0x3f   : > { %431 = vmatpush.bf16.msra.mxu2 %v760_v36  ;;  %s520_s30 = sshll.u32 %s223_s29, 4  ;;  %s522_s16 = sshll.u32 %s519_s28, 4  ;;  %s521_s30 = int_to_ptr.vmem [resolvable:$true] %s520_s30  ;;  %s523_s16 = int_to_ptr.hbm [resolvable:$true] %s522_s16 }
  0x40   : > { %333 = vmatpush.bf16.msra.mxu0 %v667_v22  ;;  %s508_s4 = scalar_lea.sflag [#allocation4], %s1135_s20  ;;  %s946_s9 = sshra.s32 %s523_s16, 4  ;;  %s947_s9 = int_to_ptr.hbm [resolvable:$true] %s946_s9 }
  0x41   : > { %347 = vmatpush.bf16.msra.mxu1 %v671_v24  ;;  %s948_s10 = scalar_lea.hbm %s947_s9, 16  ;;  %s952_s24 = scalar_lea.hbm %s1203_s3, 32 }
  0x42   : > { %p949_p1 = scmp.ne.s32.totalorder %s947_s9, %s948_s10  ;;  %p953_p11 = scmp.lt.s32.totalorder %s947_s9, %s1203_s3 }
  0x43   : > { %432 = vmatpush.bf16.msra.mxu2 %v759_v43  ;;  %p954_p9 = scmp.lt.s32.totalorder %s952_s24, %s948_s10 }
  0x44   : > { %334 = vmatpush.bf16.msra.mxu0 %v659_v30  ;;  %p950_p4 = pnand %p949_p1, %p1105_p5 }
  0x45   : > { %348 = vmatpush.bf16.msra.mxu1 %v663_v31  ;;  %p955_p2 = por %p954_p9, %p953_p11 }
  0x46   : > { %p951_p8 = pneg %p950_p4 }
  0x47   : > { %433 = vmatpush.bf16.msra.mxu2 %v758_v53 }
  0x48   : > { %335 = vmatpush.bf16.msra.mxu0 %v651_v37  ;;  %p956_p10 = pnand %p955_p2, %p951_p8 }
  0x49   : > { %349 = vmatpush.bf16.msra.mxu1 %v655_v38 }
  0x4b   : > { %434 = vmatpush.bf16.msra.mxu2 %v757_v54 }
  0x4c   : > { %336 = vmatpush.bf16.msra.mxu0 %v643_v44 }
  0x4d   : > { %350 = vmatpush.bf16.msra.mxu1 %v647_v45 }
  0x4f   : > { %435 = vmatpush.bf16.msra.mxu2 %v756_v55 }
  0x50   : > { %337 = vmatpush.bf16.msra.mxu0 %v635_v50 }
  0x51   : > { %351 = vmatpush.bf16.msra.mxu1 %v639_v51 }
  0x53   : > { %338 = vmatmul.bf16.vlgmr.msra.gmra.mxu0 %v738_v52  ;;  %436 = vmatpush.bf16.msra.mxu2 %v755_v56 }
  0x54   : > { %352 = vmatmul.bf16.vlgmr.msra.gmra.mxu1 %v738_v52 }
  0xd0   : > { %v339_v57 = vpop.f32.mrf.mxu0 }
  0xd1   : > { %v353_v58 = vpop.f32.mrf.mxu1  ;;  %v358_v59 = vmul.f32 %v339_v57, %v339_v57 }
  0xd2   : > { %v360_v60 = vmul.f32 %v353_v58, %v353_v58 }
  0xd4   : > { %v362_v1 = vadd.f32 %v360_v60, %v358_v59 }
  0xd8   : > { %v341_v61 = vpop.f32.mrf.mxu0 }
  0xd9   : > { %v359_v62 = vmul.f32 %v341_v61, %v341_v61  ;;  %v355_v63 = vpop.f32.mrf.mxu1 }
  0xda   : > { %v361_v0 = vmul.f32 %v355_v63, %v355_v63 }
  0xdc   : > { %v363_v2 = vadd.f32 %v361_v0, %v359_v62 }
  0xde   : > { %v364_v3 = vpack.c.bf16 %v363_v2, %v362_v1 }
  0xe0   : > { %437 = vmatmul.bf16.vlgmr.msra.gmra.mxu2 %v364_v3 }
 0x163   : > { %v438_v6 = vpop.f32.mrf.mxu2 }
 0x164   : > { %vm446_vm1 = vcmp.ne.f32.partialorder %v438_v6, 0.0  ;;  %vm464_vm3 = vcmp.ne.f32.partialorder %v438_v6, %v438_v6 }
 0x165   : > { %v728_v8 = vsel %vm446_vm1, 1.0, %v1010_v7  ;;  %v466_v13 = vsel %vm464_vm3, 0.0, %v438_v6 }
 0x166   : > { %v452_v9 = vsel %vm445_vm0, %v728_v8, 0.0  ;;  %vm468_vm4 = vcmp.eq.f32.partialorder %v466_v13, inf }
 0x167   : > { %454 = vmax.xlane.f32.xlu0 %v452_v9  ;;  %v470_v14 = vsel %vm468_vm4, 3.4028235e+38, %v466_v13 }
 0x168   : > { %vm472_vm6 = vcmp.eq.f32.partialorder %v470_v14, -inf }
 0x169   : > { %v474_v17 = vsel %vm472_vm6, -3.4028235e+38, %v470_v14 }
 0x16b   : > { %v440_v10 = vpop.f32.mrf.mxu2 }
 0x16c   : > { %vm447_vm2 = vcmp.ne.f32.partialorder %v440_v10, 0.0  ;;  %vm465_vm5 = vcmp.ne.f32.partialorder %v440_v10, %v440_v10 }
 0x16d   : > { %v729_v11 = vsel %vm447_vm2, 1.0, %v1010_v7  ;;  %v467_v15 = vsel %vm465_vm5, 0.0, %v440_v10 }
 0x16e   : > { %v453_v12 = vsel %vm445_vm0, %v729_v11, 0.0  ;;  %vm469_vm7 = vcmp.eq.f32.partialorder %v467_v15, inf }
 0x16f   : > { %456 = vmax.xlane.f32.xlu0 %v453_v12  ;;  %v471_v20 = vsel %vm469_vm7, 3.4028235e+38, %v467_v15 }
 0x170   : > { %vm473_vm9 = vcmp.eq.f32.partialorder %v471_v20, -inf }
 0x171   : > { %v475_v23 = vsel %vm473_vm9, -3.4028235e+38, %v471_v20 }
 0x1da   : > { %v455_v16 = vpop.xlane.xlu0 %454 }
 0x1db   : > { %vm458_vm8 = vcmp.gt.f32.partialorder %v455_v16, 0.0 }
 0x1dc   : > { %v730_v18 = vsel %vm458_vm8, 1.0, %v1010_v7 }
 0x1dd   : > { %v476_v19 = vmul.f32 %v730_v18, %v474_v17 }
 0x1df   : > { %v478_v21 = vadd.f32 1e-07, %v476_v19 }
 0x1e1   : > { %838 = vlog2.f32 %v478_v21 }
 0x1e2   : > { %v457_v22 = vpop.xlane.xlu0 %456 }
 0x1e3   : > { %vm459_vm10 = vcmp.gt.f32.partialorder %v457_v22, 0.0 }
 0x1e4   : > { %v731_v24 = vsel %vm459_vm10, 1.0, %v1010_v7 }
 0x1e5   : > { %v477_v25 = vmul.f32 %v731_v24, %v475_v23 }
 0x1e7   : > { %v839_v26 = vpop.eup %838  ;;  %v479_v27 = vadd.f32 1e-07, %v477_v25 }
 0x1e8   : > { %v481_v28 = vmul.f32 0.6931472, %v839_v26 }
 0x1e9   : > { %840 = vlog2.f32 %v479_v27 }
 0x1ea   : > { %v484_v29 = vmul.f32 0.4342945, %v481_v28 }
 0x1ec   : > { %vm486_vm11 = vcmp.ne.f32.partialorder %v484_v29, %v484_v29 }
 0x1ed   : > { %v488_v30 = vsel %vm486_vm11, 0.0, %v484_v29 }
 0x1ee   : > { %vm490_vm12 = vcmp.eq.f32.partialorder %v488_v30, inf }
 0x1ef   : > { %v841_v31 = vpop.eup %840  ;;  %v492_v32 = vsel %vm490_vm12, 3.4028235e+38, %v488_v30 }
 0x1f0   : > { %vm494_vm13 = vcmp.eq.f32.partialorder %v492_v32, -inf  ;;  %v483_v33 = vmul.f32 0.6931472, %v841_v31 }
 0x1f1   : > { %v496_v34 = vsel %vm494_vm13, -3.4028235e+38, %v492_v32 }
 0x1f2   : > { %v498_v35 = vmul.f32 %v730_v18, %v496_v34  ;;  %v485_v36 = vmul.f32 0.4342945, %v483_v33 }
 0x1f4   : > { %v500_v37 = vsel %vm445_vm0, %v498_v35, 0.0  ;;  %vm487_vm15 = vcmp.ne.f32.partialorder %v485_v36, %v485_v36 }
 0x1f5   : > { %v503_v38 = vsel %vm502_vm14, %v730_v18, %v500_v37  ;;  %v489_v39 = vsel %vm487_vm15, 0.0, %v485_v36 }
 0x1f6   : > { %505 = vst [vmem:[%s223_s29] sm:$0xff] %v503_v38  ;;  %vm491_vm1 = vcmp.eq.f32.partialorder %v489_v39, inf }
 0x1f7   : > { %v493_v40 = vsel %vm491_vm1, 3.4028235e+38, %v489_v39 }
 0x1f8   : > { %vm495_vm2 = vcmp.eq.f32.partialorder %v493_v40, -inf }
 0x1f9   : > { %v497_v41 = vsel %vm495_vm2, -3.4028235e+38, %v493_v40 }
 0x1fa   : > { %v499_v42 = vmul.f32 %v731_v24, %v497_v41 }
 0x1fc   : > { %v501_v43 = vsel %vm445_vm0, %v499_v42, 0.0 }
 0x1fd   : > { %v504_v44 = vsel %vm502_vm14, %v731_v24, %v501_v43 }
 0x1fe   : > { %506 = vst [vmem:[%s223_s29 + $0x8] sm:$0xff] %v504_v44 }
 0x1ff   : > { %959 = shalt.err (!%p956_p10)
}
 0x200   : > { %s1011_s20 = smov 128   ;;  %s1012_s27 = smov 8  }
 0x201   : > { %774 = dma.vmem_to_hbm [thread:$0]  (%p1105_p5), %s521_s30, 256, %s523_s16, %s508_s4, %s1011_s20, %s1011_s20, %s1012_s27  }
 0x202 PF: > { %s537_s5 = sand.u32 1, %s990_s12   ;;  %p1209_p12 = scmp.ge.s32.totalorder %s1002_s15, 2 }
 0x203   : > { %s538_s18 = scalar_lea.sflag [#allocation4], %s537_s5 }
 0x204   : > { %p788_p13 = pnand %p1209_p12, %p1068_p6 }
 0x206   : > { %p789_p0 = pneg %p788_p13 }
 0x208   : > { %985 = dma.done.wait (%p789_p0), %s538_s18, 256  }
 0x209   : > { %987 = vsyncadd (%p789_p0), %s538_s18, 4294967040  ;;  %p17_p3 = scmp.ge.s32.totalorder %s1092_s8, 4   ;;  %s1210_s12 = smov %s994_s13 }
 0x20a   : > { %s1211_s13 = smov %s998_s14  ;;  %s1212_s14 = smov %s1101_s11 }
 0x20b   : > { %s1213_s15 = smov %s1092_s8  ;;  %19 = sbr.rel (!%p17_p3) target bundleno = 6 (0x6), region = 85 }
 0x210   :  { %544 = vsyncpa [#allocation3], 1 }
 0x211   :  { %546 = vsyncpa [#allocation3 + $0x1], 1 }
 0x212   :  { %547 = vsyncpa [#allocation6], 1 }
 0x213   :  { %548 = vsyncpa [#allocation4], 1 }
 0x214   :  { %550 = vsyncpa [#allocation4 + $0x1], 1 }

</bundles_post_ra>
